<compile_context>
chip_gen: v5e
topology: v5e:2x2
jax: 0.10.0
libtpu: 0.0.40
codegen_flags: <defaults>
</compile_context>

<pallas_src>
import jax
import jax.numpy as jnp
from jax.experimental import pallas as pl
from jax.experimental.pallas import tpu as pltpu


def _round_up(x, m):
    return ((x + m - 1) // m) * m


def _pos_embed_kernel(w_ref, out_ref):
    # w_ref:   (seq_block, D) tile of W_pos (resident across the batch-tile axis)
    # out_ref: (batch_block, seq_block, D) output tile
    out_ref[...] = jnp.broadcast_to(
        w_ref[...].astype(out_ref.dtype)[None, :, :], out_ref.shape
    )


def _choose_tiles(B, S, D, w_itemsize, out_itemsize, vmem_budget_bytes):
    """Pick (batch_block, seq_block) under a VMEM byte budget.

    Budget model (double-buffered auto-pipeline):
        bytes ~= 2 * seq_block * D * w_itemsize
               + 2 * batch_block * seq_block * D * out_itemsize
    """
    batch_block = max(1, min(B, 8))
    s_needed = _round_up(max(S, 1), 8)

    while True:
        per_row = 2 * D * w_itemsize + 2 * batch_block * D * out_itemsize
        sb_max = (vmem_budget_bytes // per_row) // 8 * 8
        if sb_max >= 8 or batch_block == 1:
            break
        batch_block = max(1, batch_block // 2)

    seq_block = max(8, min(1024, sb_max, s_needed))

    # v7x has 2 TensorCores: if the whole grid would collapse to a single step
    # for a non-trivial sequence, split the seq-tile axis so both cores get a
    # resident W_pos tile of their own.
    seq_tiles = pl.cdiv(s_needed, seq_block)
    batch_tiles = pl.cdiv(B, batch_block)
    if seq_tiles == 1 and batch_tiles == 1 and s_needed >= 64:
        seq_block = max(8, _round_up(pl.cdiv(s_needed, 2), 8))

    return batch_block, seq_block


def pos_embed_pallas(tokens, W_pos, *, out_dtype=None, vmem_budget_bytes=20 * 1024 * 1024):
    """Pallas equivalent of PosEmbed.forward: broadcast W_pos[:S] over batch."""
    B, S = tokens.shape
    n_ctx, D = W_pos.shape
    assert S <= n_ctx, "sequence length exceeds n_ctx"

    out_dtype = W_pos.dtype if out_dtype is None else jnp.dtype(out_dtype)
    w_itemsize = jnp.dtype(W_pos.dtype).itemsize
    out_itemsize = jnp.dtype(out_dtype).itemsize

    batch_block, seq_block = _choose_tiles(
        B, S, D, w_itemsize, out_itemsize, vmem_budget_bytes
    )

    # Batch-tile axis innermost -> W_pos tile stays resident in VMEM across it.
    grid = (pl.cdiv(S, seq_block), pl.cdiv(B, batch_block))

    bytes_accessed = S * D * w_itemsize + B * S * D * out_itemsize

    out = pl.pallas_call(
        _pos_embed_kernel,
        out_shape=jax.ShapeDtypeStruct((B, S, D), out_dtype),
        grid_spec=pltpu.PrefetchScalarGridSpec(
            num_scalar_prefetch=0,
            grid=grid,
            in_specs=[
                # W_pos block index depends only on the seq-tile axis j, so it is
                # fetched from HBM once per j and reused for every batch tile b.
                # Partial last blocks (S or n_ctx not multiples of seq_block) are
                # masked by Pallas; out-of-range rows are never stored.
                pl.BlockSpec((seq_block, D), lambda j, b: (j, 0)),
            ],
            out_specs=pl.BlockSpec(
                (batch_block, seq_block, D), lambda j, b: (b, j, 0)
            ),
        ),
        compiler_params=pltpu.CompilerParams(
            # Every (j, b) step writes a disjoint output tile -> fully parallel
            # (lets v7x megacore shard across both grid axes).
            dimension_semantics=("parallel", "parallel"),
            vmem_limit_bytes=32 * 1024 * 1024,
        ),
        cost_estimate=pl.CostEstimate(
            flops=0, transcendentals=0, bytes_accessed=bytes_accessed
        ),
    )(W_pos)
    return out


def pos_embed_ref(tokens, W_pos, out_dtype=None):
    """Pure-JAX reference mirroring the PyTorch einops.repeat forward."""
    B, S = tokens.shape
    out = jnp.broadcast_to(W_pos[:S][None, :, :], (B, S, W_pos.shape[1]))
    if out_dtype is not None:
        out = out.astype(out_dtype)
    return out


if __name__ == "__main__":
    key = jax.random.PRNGKey(0)
    k_tok, k_pos, k_tok2, k_pos2 = jax.random.split(key, 4)

    # --- Case 1: small ModelConfig-like sizes (batch=2, seq=8, n_ctx=16, d_model=32)
    B, S, n_ctx, D = 2, 8, 16, 32
    init_range = 0.02
    tokens = jax.random.randint(k_tok, (B, S), 0, 100, dtype=jnp.int32)
    W_pos = (init_range * jax.random.normal(k_pos, (n_ctx, D))).astype(jnp.float32)

    out = jax.block_until_ready(pos_embed_pallas(tokens, W_pos))
    ref = pos_embed_ref(tokens, W_pos)
    assert out.shape == (B, S, D) and out.dtype == jnp.float32
    assert jnp.array_equal(out, ref), f"max abs err {jnp.max(jnp.abs(out - ref))}"

    # bf16 output path (halved writeback bytes).
    out_bf16 = jax.block_until_ready(
        pos_embed_pallas(tokens, W_pos, out_dtype=jnp.bfloat16)
    )
    ref_bf16 = pos_embed_ref(tokens, W_pos, out_dtype=jnp.bfloat16)
    assert out_bf16.dtype == jnp.bfloat16
    assert jnp.array_equal(out_bf16, ref_bf16)

    # --- Case 2: non-divisible seq length exercises the masked partial-block path.
    B2, S2, n_ctx2, D2 = 3, 20, 32, 128
    tokens2 = jax.random.randint(k_tok2, (B2, S2), 0, 100, dtype=jnp.int32)
    W_pos2 = (init_range * jax.random.normal(k_pos2, (n_ctx2, D2))).astype(jnp.float32)

    out2 = jax.block_until_ready(pos_embed_pallas(tokens2, W_pos2))
    ref2 = pos_embed_ref(tokens2, W_pos2)
    assert out2.shape == (B2, S2, D2)
    assert jnp.array_equal(out2, ref2), f"max abs err {jnp.max(jnp.abs(out2 - ref2))}"

    print("KERNEL_OK")
</pallas_src>

<mosaic_0001>
module attributes {stable_mosaic.version = 11 : i64} {
  func.func @_pos_embed_kernel(%arg0: i32, %arg1: i32, %arg2: memref<8x32xf32, #tpu.memory_space<vmem>>, %arg3: memref<2x8x32xf32, #tpu.memory_space<vmem>>) attributes {dimension_semantics = [#tpu.dimension_semantics<parallel>, #tpu.dimension_semantics<parallel>], iteration_bounds = array<i64: 1, 1>, scalar_prefetch = 0 : i64, scratch_operands = 0 : i64, tpu.core_type = #tpu.core_type<tc>, window_params = [{transform_indices = @transform_0, window_bounds = array<i64: 8, 32>}, {transform_indices = @transform_1, window_bounds = array<i64: 2, 8, 32>}]} {
    %c0 = arith.constant 0 : index
    %c0_0 = arith.constant 0 : index
    %0 = vector.load %arg2[%c0, %c0_0] : memref<8x32xf32, #tpu.memory_space<vmem>>, vector<8x32xf32>
    %1 = vector.shape_cast %0 : vector<8x32xf32> to vector<1x8x32xf32>
    %2 = vector.shape_cast %1 : vector<1x8x32xf32> to vector<1x8x32xf32>
    %3 = vector.broadcast %2 : vector<1x8x32xf32> to vector<2x8x32xf32>
    %c0_1 = arith.constant 0 : index
    %c0_2 = arith.constant 0 : index
    %c0_3 = arith.constant 0 : index
    %4 = vector.load %arg3[%c0_1, %c0_2, %c0_3] : memref<2x8x32xf32, #tpu.memory_space<vmem>>, vector<2x8x32xf32>
    tpu.vector_store %arg3[%c0_1, %c0_2, %c0_3], %3 {strides = array<i32>} : memref<2x8x32xf32, #tpu.memory_space<vmem>>, vector<2x8x32xf32>,
    return
  }
  func.func @transform_0(%arg0: i32, %arg1: i32) -> (i32, i32) {
    %c0_i32 = arith.constant 0 : i32
    %c0_i32_0 = arith.constant 0 : i32
    return %arg0, %c0_i32 : i32, i32
  }
  func.func @transform_1(%arg0: i32, %arg1: i32) -> (i32, i32, i32) {
    %c0_i32 = arith.constant 0 : i32
    %c0_i32_0 = arith.constant 0 : i32
    return %arg1, %arg0, %c0_i32 : i32, i32, i32
  }
}

</mosaic_0001>

<bundles_post_ra>
// kernel: tpu_custom_call.1
= control target key start
LH: loop header
LB: loop body
LE: loop exit
PB: predicated region body
PF: predicated region fallthrough
CT: control target
= control target key end

     0   :  { %6 = vsyncpa [#allocation3], 0  ;;  %s122_s0 = inlined_call_operand.hbm [shape: f32[16,32], index: 0, kind: input, shape index: {}]   ;;  %s123_s1 = inlined_call_operand.hbm [shape: f32[2,8,32], index: 1, kind: output, shape index: {}]  }
   0x1   :  { %7 = vsyncpa [#allocation4], 0  ;;  %s13_s8 = sshll.u32 %s122_s0, 4  ;;  %s102_s9 = smov [#allocation2]   ;;  %s14_s8 = int_to_ptr.hbm [resolvable:$true] %s13_s8 }
   0x2   :  { %s15_s10 = sshll.u32 %s102_s9, 4  ;;  %s16_s10 = int_to_ptr.vmem [resolvable:$true] %s15_s10 }
   0x3   :  { %18 = dma.hbm_to_vmem [thread:$0]  %s14_s8, 128, %s16_s10, [#allocation3]  }
   0x4   :  { %98 = dma.done.wait [#allocation3], 128  }
   0x5   :  { %99 = vsyncadd [#allocation3], 4294967168  ;;  %s103_s11 = smov [#allocation5]   ;;  %s33_s15 = sshll.u32 %s123_s1, 4  ;;  %vm24_vm0 = vcmask 261120   ;;  %v23_v0 = vld [vmem:[#allocation2] sm:$0xff]  ;;  %s34_s15 = int_to_ptr.hbm [resolvable:$true] %s33_s15 }
   0x6   :  { %s31_s12 = sshll.u32 %s103_s11, 4  ;;  %25 = vst.msk [vmem:[#allocation5] sm:$0xff] %vm24_vm0, %v23_v0  ;;  %s104_s0 = smov 128   ;;  %s32_s12 = int_to_ptr.vmem [resolvable:$true] %s31_s12 }
   0x7   :  { %26 = vst.msk [vmem:[#allocation5 + $0x8] sm:$0xff] %vm24_vm0, %v23_v0  ;;  %s105_s16 = smov 8  }
   0x8   :  { %39 = dma.vmem_to_hbm [thread:$0]  %s32_s12, 256, %s34_s15, [#allocation4], %s104_s0, %s104_s0, %s105_s16  }
   0x9   :  { %100 = dma.done.wait [#allocation4], 256  }
   0xa   :  { %101 = vsyncadd [#allocation4], 4294967040 }
   0xb   :  { %44 = vsyncpa [#allocation3], 1 }
   0xc   :  { %45 = vsyncpa [#allocation4], 1 }

</bundles_post_ra>
